<compile_context>
chip_gen: v7x
topology: tpu7x:2x2x1
jax: 0.10.0
libtpu: 0.0.40
codegen_flags: <defaults>
</compile_context>

<pallas_src>
import functools

import jax
import jax.numpy as jnp
from jax.experimental import pallas as pl
from jax.experimental.pallas import tpu as pltpu

LANE = 128


def _round_up(x, m):
    return ((x + m - 1) // m) * m


# ---------------------------------------------------------------------------
# Pallas kernel 1: fused 2-layer GCN
#   phase 0:  h1[i]   = relu(A_hat[i, :] @ (X @ W1) + b1)      -> VMEM scratch
#   phase 1:  reps[i] = (A_hat[i, :] @ h1) @ W2 + b2           -> HBM output
# ---------------------------------------------------------------------------
def _fused_gcn_kernel(a_ref, xw1_ref, b1_ref, w2_ref, b2_ref, o_ref, h1_ref, *, tm):
    phase = pl.program_id(0)
    i = pl.program_id(1)

    @pl.when(phase == 0)
    def _layer1():
        acc = jnp.dot(a_ref[...], xw1_ref[...],
                      preferred_element_type=jnp.float32)           # bf16 MXU, f32 acc
        h1 = jnp.maximum(acc + b1_ref[...], 0.0)                    # bias + ReLU in f32
        row = pl.multiple_of(i * tm, tm)
        h1_ref[pl.ds(row, tm), :] = h1.astype(h1_ref.dtype)         # keep h1 in VMEM (bf16)
        o_ref[...] = h1.astype(o_ref.dtype)                         # placeholder; overwritten in phase 1

    @pl.when(phase == 1)
    def _layer2():
        t = jnp.dot(a_ref[...], h1_ref[...],
                    preferred_element_type=jnp.float32)             # bf16 MXU, f32 acc
        o_ref[...] = (jnp.dot(t, w2_ref[...], preferred_element_type=jnp.float32)
                      + b2_ref[...]).astype(o_ref.dtype)


def fused_gcn_two_layer(a_hat_bf16, xw1_bf16, b1_pad, w2_pad, b2_pad, *, tm=128):
    n_pad = a_hat_bf16.shape[0]
    h_pad = xw1_bf16.shape[1]
    n_tiles = n_pad // tm
    kernel = functools.partial(_fused_gcn_kernel, tm=tm)
    return pl.pallas_call(
        kernel,
        out_shape=jax.ShapeDtypeStruct((n_pad, h_pad), jnp.float32),
        grid_spec=pltpu.PrefetchScalarGridSpec(
            num_scalar_prefetch=0,
            grid=(2, n_tiles),                                      # (phase, row tile)
            in_specs=[
                pl.BlockSpec((tm, n_pad), lambda p, i: (i, 0)),     # A_hat row tile (streamed)
                pl.BlockSpec((n_pad, h_pad), lambda p, i: (0, 0)),  # X @ W1 (resident)
                pl.BlockSpec((1, h_pad), lambda p, i: (0, 0)),      # b1
                pl.BlockSpec((h_pad, h_pad), lambda p, i: (0, 0)),  # W2
                pl.BlockSpec((1, h_pad), lambda p, i: (0, 0)),      # b2
            ],
            out_specs=pl.BlockSpec((tm, h_pad), lambda p, i: (i, 0)),
            scratch_shapes=[pltpu.VMEM((n_pad, h_pad), jnp.bfloat16)],  # h1
        ),
        compiler_params=pltpu.CompilerParams(
            # phase-1 rows depend on all phase-0 rows (h1 scratch) -> sequential.
            dimension_semantics=("arbitrary", "arbitrary"),
            vmem_limit_bytes=64 * 1024 * 1024,
        ),
    )(a_hat_bf16, xw1_bf16, b1_pad, w2_pad, b2_pad)


# ---------------------------------------------------------------------------
# Pallas kernel 2: reconstruction loss
#   pos = sum(pos0*pos1, -1);  neg = sum(neg0*neg1, -1)
#   loss = (sum_mask(neg^2) + sum_mask((pos-1)^2)) * N / max(n_pos + n_neg, 1)
# Masks implement `idx0 < idx1` / not-in-graph filtering with static shapes.
# ---------------------------------------------------------------------------
def _rec_loss_kernel(pos0_ref, pos1_ref, posm_ref,
                     neg0_ref, neg1_ref, negm_ref, o_ref, *, num_nodes):
    posm = posm_ref[...]
    negm = negm_ref[...]
    pos = jnp.sum(pos0_ref[...] * pos1_ref[...], axis=1, keepdims=True)   # (E, 1)
    neg = jnp.sum(neg0_ref[...] * neg1_ref[...], axis=1, keepdims=True)   # (M, 1)
    pos_err = pos - 1.0
    pos_sse = jnp.sum(posm * pos_err * pos_err, keepdims=True)            # (1, 1)
    neg_sse = jnp.sum(negm * neg * neg, keepdims=True)                    # (1, 1)
    cnt = jnp.maximum(jnp.sum(posm, keepdims=True) + jnp.sum(negm, keepdims=True), 1.0)
    o_ref[...] = (neg_sse + pos_sse) * jnp.float32(num_nodes) / cnt


def rec_loss_pallas(pos0, pos1, pos_mask, neg0, neg1, neg_mask, *, num_nodes):
    kernel = functools.partial(_rec_loss_kernel, num_nodes=num_nodes)
    return pl.pallas_call(
        kernel,
        out_shape=jax.ShapeDtypeStruct((1, 1), jnp.float32),
        in_specs=[pl.BlockSpec(memory_space=pltpu.MemorySpace.VMEM)] * 6,
        out_specs=pl.BlockSpec(memory_space=pltpu.MemorySpace.VMEM),
    )(pos0, pos1, pos_mask, neg0, neg1, neg_mask)


# ---------------------------------------------------------------------------
# EstimateAdj.forward
# ---------------------------------------------------------------------------
def estimate_adj_forward(edge_index, features, w1, b1, w2, b2, *, n_n, neg_key, tm=128):
    n = features.shape[0]
    e = edge_index.shape[1]
    h = w1.shape[1]
    edge_weight = jnp.ones((e,), jnp.float32)  # torch.ones([E]).float()

    src, dst = edge_index[0], edge_index[1]
    # Glue: dense GCNConv normalization A_hat = D^{-1/2}(A + I)D^{-1/2}, with
    # aggregation at dst from src.  Duplicate edges intentionally accumulate,
    # matching GCNConv's summed message passing / degree from edge weights.
    adj = jnp.zeros((n, n), jnp.float32).at[dst, src].add(edge_weight)
    adj_sl = adj + jnp.eye(n, dtype=jnp.float32)
    deg = jnp.sum(adj_sl, axis=1)
    dinv = jnp.where(deg > 0, jax.lax.rsqrt(deg), 0.0)
    a_hat = adj_sl * dinv[:, None] * dinv[None, :]

    # Lane/row padding so every block is (8,128)-friendly and lane-dense.
    n_pad = _round_up(max(n, tm), tm)
    h_pad = _round_up(h, LANE)

    a_hat_p = (jnp.zeros((n_pad, n_pad), jnp.float32)
               .at[:n, :n].set(a_hat).astype(jnp.bfloat16))
    xw1 = features @ w1                      # tiny matmul hoisted out of the kernel
    xw1_p = (jnp.zeros((n_pad, h_pad), jnp.float32)
             .at[:n, :h].set(xw1).astype(jnp.bfloat16))
    b1_p = jnp.zeros((1, h_pad), jnp.float32).at[0, :h].set(b1)
    w2_p = jnp.zeros((h_pad, h_pad), jnp.float32).at[:h, :h].set(w2)
    b2_p = jnp.zeros((1, h_pad), jnp.float32).at[0, :h].set(b2)

    # Pallas hot path: fused 2-layer GCN estimator (dropout = 0.0).
    reps_pad = fused_gcn_two_layer(a_hat_p, xw1_p, b1_p, w2_p, b2_p, tm=tm)
    reps = reps_pad[:n, :h]

    # reconstruct_loss
    num_neg = n_n * n
    kn0, kn1 = jax.random.split(neg_key)
    nsrc = jax.random.randint(kn0, (num_neg,), 0, n, dtype=jnp.int32)
    ndst = jax.random.randint(kn1, (num_neg,), 0, n, dtype=jnp.int32)
    # TODO(synk): torch_geometric negative_sampling rejection-resamples until
    # num_neg valid pairs exist; here sampled pairs hitting the graph are
    # masked out instead, so the effective count / denominator can differ.
    not_in_graph = adj[ndst, nsrc] == 0
    neg_mask = (not_in_graph & (nsrc < ndst)).astype(jnp.float32)[:, None]
    pos_mask = (src < dst).astype(jnp.float32)[:, None]

    # Gather from the lane-padded reps (padded columns are exactly zero, so
    # 128-lane dot products equal the H-wide ones) -> lane-dense loss inputs.
    # TODO(synk): fusing these gathers into the GCN kernel (scalar-prefetch row
    # gather from the VMEM-resident reps) needs an in-kernel dynamic gather;
    # kept as XLA gathers + one small Pallas reduction kernel.
    pos0 = reps_pad[src]
    pos1 = reps_pad[dst]
    neg0 = reps_pad[nsrc]
    neg1 = reps_pad[ndst]

    def _pad_rows(x, m=8):
        r = _round_up(x.shape[0], m)
        return jnp.pad(x, ((0, r - x.shape[0]), (0, 0)))

    pos0, pos1, pos_mask = (_pad_rows(a) for a in (pos0, pos1, pos_mask))
    neg0, neg1, neg_mask = (_pad_rows(a) for a in (neg0, neg1, neg_mask))

    rec_loss = rec_loss_pallas(pos0, pos1, pos_mask, neg0, neg1, neg_mask,
                               num_nodes=n)
    return reps, rec_loss[0, 0]


if __name__ == "__main__":
    key = jax.random.PRNGKey(0)
    N, NFEA, HID = 64, 32, 32   # num nodes, nfea, args.edge_hidden
    E = 256                     # number of directed edges
    N_N = 5                     # args.n_n -> num_neg_samples = n_n * N

    k1, k2, k3, k4, k5, k6 = jax.random.split(key, 6)
    src = jax.random.randint(k1, (E,), 0, N, dtype=jnp.int32)
    dst = jax.random.randint(k2, (E,), 0, N, dtype=jnp.int32)
    edge_index = jnp.stack([src, dst])                        # [2, E]
    features = jax.random.normal(k3, (N, NFEA), jnp.float32)  # [N, F]

    # Deterministic Glorot-style init for the 2 GCNConv layers (bias = 0).
    w1 = jax.random.normal(k4, (NFEA, HID), jnp.float32) * (2.0 / (NFEA + HID)) ** 0.5
    b1 = jnp.zeros((HID,), jnp.float32)
    w2 = jax.random.normal(k5, (HID, HID), jnp.float32) * (2.0 / (HID + HID)) ** 0.5
    b2 = jnp.zeros((HID,), jnp.float32)

    reps, rec_loss = estimate_adj_forward(edge_index, features, w1, b1, w2, b2,
                                          n_n=N_N, neg_key=k6)
    jax.block_until_ready((reps, rec_loss))
    assert reps.shape == (N, HID) and rec_loss.shape == ()
    assert bool(jnp.all(jnp.isfinite(reps))) and bool(jnp.isfinite(rec_loss))
    print("KERNEL_OK")
</pallas_src>

<mosaic_0001>
module attributes {stable_mosaic.version = 11 : i64} {
  func.func @_fused_gcn_kernel(%arg0: i32, %arg1: i32, %arg2: memref<128x128xbf16, #tpu.memory_space<vmem>>, %arg3: memref<128x128xbf16, #tpu.memory_space<vmem>>, %arg4: memref<1x128xf32, #tpu.memory_space<vmem>>, %arg5: memref<128x128xf32, #tpu.memory_space<vmem>>, %arg6: memref<1x128xf32, #tpu.memory_space<vmem>>, %arg7: memref<128x128xf32, #tpu.memory_space<vmem>>, %arg8: memref<128x128xbf16, #tpu.memory_space<vmem>>) attributes {dimension_semantics = [#tpu.dimension_semantics<arbitrary>, #tpu.dimension_semantics<arbitrary>], iteration_bounds = array<i64: 2, 1>, scalar_prefetch = 0 : i64, scratch_operands = 1 : i64, tpu.core_type = #tpu.core_type<tc>, window_params = [{transform_indices = @transform_0, window_bounds = array<i64: 128, 128>}, {pipeline_mode = #tpu.pipeline_mode<synchronous>, transform_indices = @transform_1, window_bounds = array<i64: 128, 128>}, {pipeline_mode = #tpu.pipeline_mode<synchronous>, transform_indices = @transform_2, window_bounds = array<i64: 1, 128>}, {pipeline_mode = #tpu.pipeline_mode<synchronous>, transform_indices = @transform_3, window_bounds = array<i64: 128, 128>}, {pipeline_mode = #tpu.pipeline_mode<synchronous>, transform_indices = @transform_4, window_bounds = array<i64: 1, 128>}, {transform_indices = @transform_5, window_bounds = array<i64: 128, 128>}]} {
    %c0_i32 = arith.constant 0 : i32
    %0 = arith.cmpi eq, %arg0, %c0_i32 : i32
    %1 = arith.extui %0 : i1 to i32
    %c0_i32_0 = arith.constant 0 : i32
    %2 = arith.cmpi ne, %1, %c0_i32_0 : i32
    scf.if %2 {
      %c0 = arith.constant 0 : index
      %c0_2 = arith.constant 0 : index
      %6 = vector.load %arg2[%c0, %c0_2] : memref<128x128xbf16, #tpu.memory_space<vmem>>, vector<128x128xbf16>
      %c0_3 = arith.constant 0 : index
      %c0_4 = arith.constant 0 : index
      %7 = vector.load %arg3[%c0_3, %c0_4] : memref<128x128xbf16, #tpu.memory_space<vmem>>, vector<128x128xbf16>
      %cst = arith.constant dense<0.000000e+00> : vector<128x128xf32>
      %8 = tpu.matmul %6, %7, %cst {dimension_numbers = #tpu.dot_dimension_numbers<[1], [0], [0], [1], [0, 0, 1, 1], [], []>} : vector<128x128xbf16>, vector<128x128xbf16>, vector<128x128xf32> -> vector<128x128xf32>
      %c0_5 = arith.constant 0 : index
      %c0_6 = arith.constant 0 : index
      %9 = vector.load %arg4[%c0_5, %c0_6] : memref<1x128xf32, #tpu.memory_space<vmem>>, vector<1x128xf32>
      %10 = vector.broadcast %9 : vector<1x128xf32> to vector<128x128xf32>
      %11 = arith.addf %8, %10 : vector<128x128xf32>
      %cst_7 = arith.constant 0.000000e+00 : f32
      %12 = vector.broadcast %cst_7 : f32 to vector<128x128xf32>
      %13 = arith.maximumf %11, %12 : vector<128x128xf32>
      %c128_i32 = arith.constant 128 : i32
      %14 = arith.muli %arg1, %c128_i32 : i32
      %15 = tpu.assume_multiple %14, 128 : i32
      %16 = arith.truncf %13 : vector<128x128xf32> to vector<128x128xbf16>
      %17 = arith.index_cast %15 : i32 to index
      %c0_8 = arith.constant 0 : index
      %18 = vector.load %arg8[%17, %c0_8] : memref<128x128xbf16, #tpu.memory_space<vmem>>, vector<128x128xbf16>
      tpu.vector_store %arg8[%17, %c0_8], %16 {strides = array<i32>} : memref<128x128xbf16, #tpu.memory_space<vmem>>, vector<128x128xbf16>,
      %c0_9 = arith.constant 0 : index
      %c0_10 = arith.constant 0 : index
      %19 = vector.load %arg7[%c0_9, %c0_10] : memref<128x128xf32, #tpu.memory_space<vmem>>, vector<128x128xf32>
      tpu.vector_store %arg7[%c0_9, %c0_10], %13 {strides = array<i32>} : memref<128x128xf32, #tpu.memory_space<vmem>>, vector<128x128xf32>,
    } else {
    }
    %c1_i32 = arith.constant 1 : i32
    %3 = arith.cmpi eq, %arg0, %c1_i32 : i32
    %4 = arith.extui %3 : i1 to i32
    %c0_i32_1 = arith.constant 0 : i32
    %5 = arith.cmpi ne, %4, %c0_i32_1 : i32
    scf.if %5 {
      %c0 = arith.constant 0 : index
      %c0_2 = arith.constant 0 : index
      %6 = vector.load %arg2[%c0, %c0_2] : memref<128x128xbf16, #tpu.memory_space<vmem>>, vector<128x128xbf16>
      %c0_3 = arith.constant 0 : index
      %c0_4 = arith.constant 0 : index
      %7 = vector.load %arg8[%c0_3, %c0_4] : memref<128x128xbf16, #tpu.memory_space<vmem>>, vector<128x128xbf16>
      %cst = arith.constant dense<0.000000e+00> : vector<128x128xf32>
      %8 = tpu.matmul %6, %7, %cst {dimension_numbers = #tpu.dot_dimension_numbers<[1], [0], [0], [1], [0, 0, 1, 1], [], []>} : vector<128x128xbf16>, vector<128x128xbf16>, vector<128x128xf32> -> vector<128x128xf32>
      %c0_5 = arith.constant 0 : index
      %c0_6 = arith.constant 0 : index
      %9 = vector.load %arg5[%c0_5, %c0_6] : memref<128x128xf32, #tpu.memory_space<vmem>>, vector<128x128xf32>
      %cst_7 = arith.constant dense<0.000000e+00> : vector<128x128xf32>
      %10 = tpu.matmul %8, %9, %cst_7 {dimension_numbers = #tpu.dot_dimension_numbers<[1], [0], [0], [1], [0, 0, 1, 1], [], []>} : vector<128x128xf32>, vector<128x128xf32>, vector<128x128xf32> -> vector<128x128xf32>
      %c0_8 = arith.constant 0 : index
      %c0_9 = arith.constant 0 : index
      %11 = vector.load %arg6[%c0_8, %c0_9] : memref<1x128xf32, #tpu.memory_space<vmem>>, vector<1x128xf32>
      %12 = vector.broadcast %11 : vector<1x128xf32> to vector<128x128xf32>
      %13 = arith.addf %10, %12 : vector<128x128xf32>
      %c0_10 = arith.constant 0 : index
      %c0_11 = arith.constant 0 : index
      %14 = vector.load %arg7[%c0_10, %c0_11] : memref<128x128xf32, #tpu.memory_space<vmem>>, vector<128x128xf32>
      tpu.vector_store %arg7[%c0_10, %c0_11], %13 {strides = array<i32>} : memref<128x128xf32, #tpu.memory_space<vmem>>, vector<128x128xf32>,
    } else {
    }
    return
  }
  func.func @transform_0(%arg0: i32, %arg1: i32) -> (i32, i32) {
    %c0_i32 = arith.constant 0 : i32
    %c0_i32_0 = arith.constant 0 : i32
    return %arg1, %c0_i32 : i32, i32
  }
  func.func @transform_1(%arg0: i32, %arg1: i32) -> (i32, i32) {
    %c0_i32 = arith.constant 0 : i32
    %c0_i32_0 = arith.constant 0 : i32
    %c0_i32_1 = arith.constant 0 : i32
    return %c0_i32, %c0_i32_0 : i32, i32
  }
  func.func @transform_2(%arg0: i32, %arg1: i32) -> (i32, i32) {
    %c0_i32 = arith.constant 0 : i32
    %c0_i32_0 = arith.constant 0 : i32
    %c0_i32_1 = arith.constant 0 : i32
    return %c0_i32, %c0_i32_0 : i32, i32
  }
  func.func @transform_3(%arg0: i32, %arg1: i32) -> (i32, i32) {
    %c0_i32 = arith.constant 0 : i32
    %c0_i32_0 = arith.constant 0 : i32
    %c0_i32_1 = arith.constant 0 : i32
    return %c0_i32, %c0_i32_0 : i32, i32
  }
  func.func @transform_4(%arg0: i32, %arg1: i32) -> (i32, i32) {
    %c0_i32 = arith.constant 0 : i32
    %c0_i32_0 = arith.constant 0 : i32
    %c0_i32_1 = arith.constant 0 : i32
    return %c0_i32, %c0_i32_0 : i32, i32
  }
  func.func @transform_5(%arg0: i32, %arg1: i32) -> (i32, i32) {
    %c0_i32 = arith.constant 0 : i32
    %c0_i32_0 = arith.constant 0 : i32
    return %arg1, %c0_i32 : i32, i32
  }
}

</mosaic_0001>

<bundles_post_ra>
// kernel: tpu_custom_call.1
= control target key start
LH: loop header
LB: loop body
LE: loop exit
PB: predicated region body
PF: predicated region fallthrough
CT: control target
= control target key end

     0   :  { %10 = vsyncpa [#allocation4], 0  ;;  %s1876_s0 = inlined_call_operand.hbm [shape: bf16[128,128], index: 0, kind: input, shape index: {}]   ;;  %s1877_s1 = inlined_call_operand.hbm [shape: bf16[128,128], index: 1, kind: input, shape index: {}]   ;;  %s1878_s2 = inlined_call_operand.hbm [shape: f32[1,128], index: 2, kind: input, shape index: {}]   ;;  %s1879_s3 = inlined_call_operand.hbm [shape: f32[128,128], index: 3, kind: input, shape index: {}]   ;;  %s1880_s4 = inlined_call_operand.hbm [shape: f32[1,128], index: 4, kind: input, shape index: {}]   ;;  %s1881_s5 = inlined_call_operand.hbm [shape: f32[128,128], index: 5, kind: output, shape index: {}]  }
   0x1   :  { %11 = vsyncpa [#allocation7], 0 }
   0x2   :  { %12 = vsyncpa [#allocation10], 0 }
   0x3   :  { %13 = vsyncpa [#allocation5], 0  ;;  %s1675_s18 = smov 0   ;;  %s1677_s19 = smov 0  }
   0x4   :  { %s1679_s20 = smov 0  }
   0x5 LB: > { %s1038_s21 = sadd.s32 4294967295, %s1631_s20   ;;  %p1039_p0 = scmp.ge.s32.totalorder %s1631_s20, 1  ;;  %s1631_s20 = sphi %s1679_s20, %s19_s20   ;;  %s1627_s19 = sphi %s1677_s19, %s1893_s19   ;;  %s1623_s18 = sphi %s1675_s18, %s1892_s18  }
   0x6   : > { %p172_p1 = scmp.lt.s32.totalorder %s1631_s20, 3  ;;  %p1695_p2 = scmp.eq.s32.totalorder %s1038_s21, 0 }
   0x7   : > { %s1633_s24 = smov [#allocation6]   ;;  %s1634_s26 = smov [#allocation9]  }
   0x8   : > { %s1885_s22 = scalar_select %p1695_p2, 1, 0 }
   0x9   : > { %p1699_p3 = pnand %p1039_p0, %p172_p1  ;;  %s200_s25 = sshll.u32 %s1633_s24, 4  ;;  %s201_s25 = int_to_ptr.vmem [resolvable:$true] %s200_s25 }
   0xa   : > { %s224_s27 = sshll.u32 %s1634_s26, 4  ;;  %s1427_s6 = scalar_lea.hbm %s1877_s1, 1024  ;;  %s1705_s27 = int_to_ptr.vmem [resolvable:$true] %s224_s27 }
   0xb   : > { %s1886_s23 = scalar_select %p1699_p3, 1, 0 }
   0xc   : > { %p1339_p4 = pneg %p1699_p3  ;;  %p1428_p6 = scmp.ne.s32.totalorder %s1877_s1, %s1427_s6 }
   0xd   : > { %p1434_p10 = scmp.lt.u32.totalorder %s1427_s6, %s1877_s1 }
   0xe   : > { %p1709_p5 = pnand %p1695_p2, %p1339_p4 }
  0x10   : > { %p1721_p7 = pneg %p1709_p5 }
  0x12   : > { %p1430_p8 = pnand %p1721_p7, %p1428_p6 }
  0x14   : > { %p1431_p9 = pneg %p1430_p8 }
  0x16   : > { %p1436_p11 = pnand %p1434_p10, %p1431_p9 }
  0x18   : > { %1439 = shalt.err (!%p1436_p11)
}
  0x19   : > { %s1440_s12 = scalar_lea.vmem %s201_s25, 1024  ;;  %p1448_p1 = scmp.lt.s32.totalorder %s201_s25, %s201_s25 }
  0x1a   : > { %p1441_p12 = scmp.ne.s32.totalorder %s201_s25, %s1440_s12  ;;  %p1449_p4 = scmp.lt.s32.totalorder %s1440_s12, %s1440_s12 }
  0x1c   : > { %p1443_p13 = pnand %p1441_p12, %p1721_p7  ;;  %p1450_p2 = por %p1449_p4, %p1448_p1 }
  0x1e   : > { %p1444_p0 = pneg %p1443_p13 }
  0x20   : > { %p1451_p3 = pnand %p1450_p2, %p1444_p0 }
  0x22   : > { %1454 = shalt.err (!%p1451_p3)
}
  0x23   : > { %s1635_s13 = smov 64   ;;  %s1636_s14 = smov 4  }
  0x24   : > { %1345 = dma.hbm_to_vmem [thread:$0]  (!%p1709_p5), %s1877_s1, 1024, %s201_s25, [#allocation7], %s1635_s13, %s1635_s13, %s1636_s14  }
  0x25   : > { %s1455_s26 = scalar_lea.hbm %s1879_s3, 2048 }
  0x26   : > { %p1456_p2 = scmp.ne.s32.totalorder %s1879_s3, %s1455_s26  ;;  %p1462_p8 = scmp.lt.u32.totalorder %s1455_s26, %s1879_s3 }
  0x28   : > { %p1458_p3 = pnand %p1456_p2, %p1721_p7 }
  0x2a   : > { %p1459_p6 = pneg %p1458_p3 }
  0x2c   : > { %p1464_p9 = pnand %p1462_p8, %p1459_p6 }
  0x2e   : > { %1467 = shalt.err (!%p1464_p9)
}
  0x2f   : > { %s1468_s25 = scalar_lea.vmem %s1705_s27, 2048  ;;  %p1476_p13 = scmp.lt.s32.totalorder %s1705_s27, %s1705_s27 }
  0x30   : > { %p1469_p10 = scmp.ne.s32.totalorder %s1705_s27, %s1468_s25  ;;  %p1477_p0 = scmp.lt.s32.totalorder %s1468_s25, %s1468_s25 }
  0x32   : > { %p1471_p11 = pnand %p1469_p10, %p1721_p7  ;;  %p1478_p1 = por %p1477_p0, %p1476_p13 }
  0x34   : > { %p1472_p12 = pneg %p1471_p11 }
  0x36   : > { %p1479_p4 = pnand %p1478_p1, %p1472_p12 }
  0x38   : > { %1482 = shalt.err (!%p1479_p4)
}
  0x39   : > { %s1637_s8 = smov 128   ;;  %s1638_s10 = smov 8  }
  0x3a   : > { %1351 = dma.hbm_to_vmem [thread:$0]  (!%p1709_p5), %s1879_s3, 2048, %s1705_s27, [#allocation10], %s1637_s8, %s1637_s8, %s1638_s10  }
  0x3b   : > { %s31_s15 = sadd.s32 1, %s1627_s19  ;;  %s1639_s16 = smov [#allocation3]  }
  0x3c   : > { %p33_p2 = scmp.ge.s32.totalorder %s31_s15, 2  ;;  %s187_s17 = sshll.u32 %s1639_s16, 4  ;;  %s188_s17 = int_to_ptr.vmem [resolvable:$true] %s187_s17 }
  0x3d   : > { %s1640_s24 = smov [#allocation8]   ;;  %s1483_s6 = scalar_lea.hbm %s1876_s0, 1024 }
  0x3e   : > { %s1895_s15 = smov (%p33_p2, %s31_s15), 0  ;;  %s214_s26 = sshll.u32 %s1640_s24, 4  ;;  %s215_s26 = int_to_ptr.vmem [resolvable:$true] %s214_s26 }
  0x3f   : > { %p1484_p3 = scmp.ne.s32.totalorder %s1876_s0, %s1483_s6  ;;  %p1490_p9 = scmp.lt.u32.totalorder %s1483_s6, %s1876_s0 }
  0x41   : > { %p1486_p6 = pnand %p1484_p3, %p1721_p7 }
  0x43   : > { %p1487_p8 = pneg %p1486_p6 }
  0x45   : > { %p1492_p10 = pnand %p1490_p9, %p1487_p8 }
  0x47   : > { %1495 = shalt.err (!%p1492_p10)
}
  0x48   : > { %s1496_s10 = scalar_lea.vmem %s188_s17, 1024  ;;  %p1504_p0 = scmp.lt.s32.totalorder %s188_s17, %s188_s17 }
  0x49   : > { %p1497_p11 = scmp.ne.s32.totalorder %s188_s17, %s1496_s10  ;;  %p1505_p1 = scmp.lt.s32.totalorder %s1496_s10, %s1496_s10 }
  0x4b   : > { %p1499_p12 = pnand %p1497_p11, %p1721_p7  ;;  %p1506_p4 = por %p1505_p1, %p1504_p0 }
  0x4d   : > { %p1500_p13 = pneg %p1499_p12 }
  0x4f   : > { %p1507_p2 = pnand %p1506_p4, %p1500_p13 }
  0x51   : > { %1510 = shalt.err (!%p1507_p2)
}
  0x52   : > { %1342 = dma.hbm_to_vmem [thread:$0]  (!%p1709_p5), %s1876_s0, 1024, %s188_s17, [#allocation4], %s1635_s13, %s1635_s13, %s1636_s14  }
  0x53   : > { %s1511_s29 = scalar_lea.hbm %s1878_s2, 16 }
  0x54   : > { %p1512_p3 = scmp.ne.s32.totalorder %s1878_s2, %s1511_s29  ;;  %p1518_p9 = scmp.lt.u32.totalorder %s1511_s29, %s1878_s2 }
  0x56   : > { %p1514_p6 = pnand %p1512_p3, %p1721_p7 }
  0x58   : > { %p1515_p8 = pneg %p1514_p6 }
  0x5a   : > { %p1520_p10 = pnand %p1518_p9, %p1515_p8 }
  0x5c   : > { %1523 = shalt.err (!%p1520_p10)
}
  0x5d   : > { %s1524_s27 = scalar_lea.vmem %s215_s26, 16  ;;  %s1531_s13 = scalar_lea.vmem %s215_s26, 32 }
  0x5e   : > { %p1525_p11 = scmp.ne.s32.totalorder %s215_s26, %s1524_s27  ;;  %p1532_p0 = scmp.lt.s32.totalorder %s215_s26, %s215_s26 }
  0x5f   : > { %p1533_p1 = scmp.lt.s32.totalorder %s1531_s13, %s1524_s27 }
  0x60   : > { %p1527_p12 = pnand %p1525_p11, %p1721_p7 }
  0x61   : > { %p1534_p4 = por %p1533_p1, %p1532_p0 }
  0x62   : > { %p1528_p13 = pneg %p1527_p12 }
  0x64   : > { %p1535_p2 = pnand %p1534_p4, %p1528_p13 }
  0x66   : > { %1538 = shalt.err (!%p1535_p2)
}
  0x67   : > { %1348 = dma.hbm_to_vmem [thread:$0]  (!%p1709_p5), %s1878_s2, 16, %s215_s26, [#allocation7]  }
  0x68   : > { %s1641_s8 = smov [#allocation11]   ;;  %s1539_s16 = scalar_lea.hbm %s1880_s4, 16 }
  0x69   : > { %s238_s10 = sshll.u32 %s1641_s8, 4  ;;  %p1540_p3 = scmp.ne.s32.totalorder %s1880_s4, %s1539_s16  ;;  %s239_s10 = int_to_ptr.vmem [resolvable:$true] %s238_s10 }
  0x6a   : > { %p1546_p9 = scmp.lt.u32.totalorder %s1539_s16, %s1880_s4 }
  0x6b   : > { %p1542_p6 = pnand %p1540_p3, %p1721_p7 }
  0x6d   : > { %p1543_p8 = pneg %p1542_p6 }
  0x6f   : > { %p1548_p10 = pnand %p1546_p9, %p1543_p8 }
  0x71   : > { %1551 = shalt.err (!%p1548_p10)
}
  0x72   : > { %s1552_s26 = scalar_lea.vmem %s239_s10, 16  ;;  %s1559_s7 = scalar_lea.vmem %s239_s10, 32 }
  0x73   : > { %p1553_p11 = scmp.ne.s32.totalorder %s239_s10, %s1552_s26  ;;  %p1560_p0 = scmp.lt.s32.totalorder %s239_s10, %s239_s10 }
  0x74   : > { %p1561_p1 = scmp.lt.s32.totalorder %s1559_s7, %s1552_s26 }
  0x75   : > { %p1555_p12 = pnand %p1553_p11, %p1721_p7 }
  0x76   : > { %p1562_p4 = por %p1561_p1, %p1560_p0 }
  0x77   : > { %p1556_p13 = pneg %p1555_p12 }
  0x79   : > { %p1563_p2 = pnand %p1562_p4, %p1556_p13 }
  0x7b   : > { %1566 = shalt.err (!%p1563_p2)
}
  0x7c   : > { %1354 = dma.hbm_to_vmem [thread:$0]  (!%p1709_p5), %s1880_s4, 16, %s239_s10, [#allocation10]  }
  0x7d   : > { %p1889_p3 = scmp.ne.s32.totalorder %s1886_s23, 0 }
  0x7e   : > { %p1890_p6 = scmp.ne.s32.totalorder (!%p1889_p3), %s1885_s22, 0 }
  0x7f   : > { %251 = sbr.rel (%p1889_p3) target bundleno = 922 (0x39a), region = 40 }
  0x86   : > { %1606 = dma.done.wait (%p1890_p6), [#allocation4], 1024  }
  0x87   : > { %1608 = vsyncadd (%p1890_p6), [#allocation4], 4294966272 }
  0x88   : > { %1610 = dma.done.wait (%p1890_p6), [#allocation7], 1040  }
  0x89   : > { %1612 = vsyncadd (%p1890_p6), [#allocation7], 4294966256 }
  0x8a   : > { %1614 = dma.done.wait (%p1890_p6), [#allocation10], 2064  }
  0x8b   : > { %1616 = vsyncadd (%p1890_p6), [#allocation10], 4294965232  ;;  %p1051_p5 = scmp.ne.s32.totalorder %s1623_s18, 0 }
  0x8c   : > { %v1403_v0 = vld [vmem:[#allocation6] sm:$0xff] (!%p1051_p5)   ;;  %v1404_v1 = vld [vmem:[#allocation6 + $0x8] sm:$0xff] (!%p1051_p5)   ;;  %v1405_v2 = vld [vmem:[#allocation6 + $0x10] sm:$0xff] (!%p1051_p5)  }
  0x8d   : > { %291 = sbr.rel (%p1051_p5) target bundleno = 403 (0x193), region = 64  ;;  %1147 = vmatprep.subr.bf16.mxu0 (!%p1051_p5), %v1403_v0  ;;  %1299 = vmatprep.subr.bf16.mxu1 (!%p1051_p5), %v1403_v0  ;;  %v1406_v3 = vld [vmem:[#allocation6 + $0x18] sm:$0xff] (!%p1051_p5)   ;;  %v1411_v4 = vld [vmem:[#allocation3] sm:$0xff] (!%p1051_p5)   ;;  %v1408_v7 = vld [vmem:[#allocation6 + $0x28] sm:$0xff] (!%p1051_p5)  }
  0x8e   : > { %1148 = vmatpush3.bf16.msra.mxu0 (!%p1051_p5), %v1403_v0  ;;  %1307 = vmatpush3.bf16.msra.mxu1 (!%p1051_p5), %v1403_v0  ;;  %v1412_v5 = vld [vmem:[#allocation3 + $0x20] sm:$0xff] (!%p1051_p5)   ;;  %v1409_v8 = vld [vmem:[#allocation6 + $0x30] sm:$0xff] (!%p1051_p5)   ;;  %v1410_v9 = vld [vmem:[#allocation6 + $0x38] sm:$0xff] (!%p1051_p5)  }
  0x8f   : > { %1149 = vmatprep.subr.bf16.mxu0 (!%p1051_p5), %v1404_v1  ;;  %1300 = vmatprep.subr.bf16.mxu1 (!%p1051_p5), %v1404_v1  ;;  %v1407_v6 = vld [vmem:[#allocation6 + $0x20] sm:$0xff] (!%p1051_p5)   ;;  %v1413_v10 = vld [vmem:[#allocation3 + $0x8] sm:$0xff] (!%p1051_p5)   ;;  %v1415_v12 = vld [vmem:[#allocation3 + $0x10] sm:$0xff] (!%p1051_p5)  }
  0x90   : > { %1163 = vmatprep.mubr.bf16.mxu0 (!%p1051_p5), %v1411_v4  ;;  %1171 = vmatprep.mubr.bf16.mxu1 (!%p1051_p5), %v1412_v5  ;;  %v1414_v11 = vld [vmem:[#allocation3 + $0x28] sm:$0xff] (!%p1051_p5)   ;;  %v1416_v13 = vld [vmem:[#allocation3 + $0x30] sm:$0xff] (!%p1051_p5)   ;;  %v1417_v14 = vld [vmem:[#allocation3 + $0x18] sm:$0xff] (!%p1051_p5)  }
  0x91   : > { %v1418_v15 = vld [vmem:[#allocation3 + $0x38] sm:$0xff] (!%p1051_p5)   ;;  %v1052_v16 = vld [vmem:[#allocation8] ss:$0 sm:$0xff] (!%p1051_p5) }
  0x92   : > { %1150 = vmatpush3.bf16.msra.mxu0 (!%p1051_p5), %v1404_v1  ;;  %1308 = vmatpush3.bf16.msra.mxu1 (!%p1051_p5), %v1404_v1 }
  0x93   : > { %1151 = vmatprep.subr.bf16.mxu0 (!%p1051_p5), %v1405_v2  ;;  %1301 = vmatprep.subr.bf16.mxu1 (!%p1051_p5), %v1405_v2 }
  0x96   : > { %1152 = vmatpush3.bf16.msra.mxu0 %v1405_v2  ;;  %1309 = vmatpush3.bf16.msra.mxu1 %v1405_v2 }
  0x97   : > { %1153 = vmatprep.subr.bf16.mxu0 %v1406_v3  ;;  %1302 = vmatprep.subr.bf16.mxu1 %v1406_v3 }
  0x9a   : > { %1154 = vmatpush3.bf16.msra.mxu0 %v1406_v3  ;;  %1310 = vmatpush3.bf16.msra.mxu1 %v1406_v3 }
  0x9b   : > { %1155 = vmatprep.subr.bf16.mxu0 %v1407_v6  ;;  %1303 = vmatprep.subr.bf16.mxu1 %v1407_v6 }
  0x9e   : > { %1156 = vmatpush3.bf16.msra.mxu0 %v1407_v6  ;;  %1311 = vmatpush3.bf16.msra.mxu1 %v1407_v6 }
  0x9f   : > { %1157 = vmatprep.subr.bf16.mxu0 %v1408_v7  ;;  %1304 = vmatprep.subr.bf16.mxu1 %v1408_v7 }
  0xa2   : > { %1158 = vmatpush3.bf16.msra.mxu0 %v1408_v7  ;;  %1312 = vmatpush3.bf16.msra.mxu1 %v1408_v7 }
  0xa3   : > { %1159 = vmatprep.subr.bf16.mxu0 %v1409_v8  ;;  %1305 = vmatprep.subr.bf16.mxu1 %v1409_v8 }
  0xa6   : > { %1160 = vmatpush3.bf16.msra.mxu0 %v1409_v8  ;;  %1313 = vmatpush3.bf16.msra.mxu1 %v1409_v8 }
  0xa7   : > { %1161 = vmatprep.subr.bf16.mxu0 %v1410_v9  ;;  %1306 = vmatprep.subr.bf16.mxu1 %v1410_v9 }
  0xaa   : > { %1162 = vmatpush3.bf16.msra.mxu0 %v1410_v9  ;;  %1314 = vmatpush3.bf16.msra.mxu1 %v1410_v9 }
  0xad   : > { %1164 = vmatmul.mubr.bf16.vlgmr.msra.gmra.mrb[0].mxu0 %v1413_v10  ;;  %1172 = vmatmul.mubr.bf16.vlgmr.msra.gmra.mrb[0].mxu1 %v1414_v11 }
  0xae   : > { %1167 = vmatprep.mubr.bf16.mxu0 %v1415_v12  ;;  %1175 = vmatprep.mubr.bf16.mxu1 %v1416_v13 }
  0xb5   : > { %1168 = vmatmul.mubr.bf16.gmra.mrb[4].mxu0 %v1417_v14  ;;  %1176 = vmatmul.mubr.bf16.gmra.mrb[4].mxu1 %v1418_v15 }
 0x180   : > { %v1165_v17 = vpop.f32.mrb[0].mxu0  ;;  %v1173_v18 = vpop.f32.mrb[0].mxu1 }
 0x181   : > { %v470_v19 = vadd.f32 %v1165_v17, %v1052_v16  ;;  %v502_v20 = vadd.f32 %v1173_v18, %v1052_v16  ;;  %v461_v21 = vpop.f32.mrb[1].mxu0  ;;  %v493_v22 = vpop.f32.mrb[1].mxu1 }
 0x182   : > { %v462_v23 = vadd.f32 %v1052_v16, %v461_v21  ;;  %v494_v24 = vadd.f32 %v1052_v16, %v493_v22  ;;  %v1166_v25 = vpop.f32.mrb[2].mxu0  ;;  %v1174_v26 = vpop.f32.mrb[2].mxu1 }
 0x183   : > { %v526_v27 = vmax.f32 %v470_v19, 0.0  ;;  %v534_v28 = vmax.f32 %v502_v20, 0.0  ;;  %v473_v29 = vadd.f32 %v1166_v25, %v1052_v16  ;;  %v505_v30 = vadd.f32 %v1174_v26, %v1052_v16  ;;  %v464_v31 = vpop.f32.mrb[3].mxu0  ;;  %v496_v32 = vpop.f32.mrb[3].mxu1 }
 0x184   : > { %v524_v33 = vmax.f32 %v462_v23, 0.0  ;;  %v532_v34 = vmax.f32 %v494_v24, 0.0  ;;  %v465_v35 = vadd.f32 %v1052_v16, %v464_v31  ;;  %v497_v36 = vadd.f32 %v1052_v16, %v496_v32 }
 0x185   : > { %563 = vst [vmem:[#allocation12 + $0x10] sm:$0xff] %v526_v27  ;;  %571 = vst [vmem:[#allocation12 + $0x50] sm:$0xff] %v534_v28  ;;  %v527_v37 = vmax.f32 %v473_v29, 0.0  ;;  %v535_v38 = vmax.f32 %v505_v30, 0.0 }
 0x186   : > { %561 = vst [vmem:[#allocation12] sm:$0xff] %v524_v33  ;;  %569 = vst [vmem:[#allocation12 + $0x40] sm:$0xff] %v532_v34  ;;  %v525_v39 = vmax.f32 %v465_v35, 0.0  ;;  %v533_v40 = vmax.f32 %v497_v36, 0.0 }
 0x187   : > { %v542_v41 = vpack.c.bf16 %v527_v37, %v526_v27  ;;  %564 = vst [vmem:[#allocation12 + $0x18] sm:$0xff] %v527_v37  ;;  %v546_v42 = vpack.c.bf16 %v535_v38, %v534_v28  ;;  %572 = vst [vmem:[#allocation12 + $0x58] sm:$0xff] %v535_v38 }
 0x188   : > { %v541_v43 = vpack.c.bf16 %v525_v39, %v524_v33  ;;  %562 = vst [vmem:[#allocation12 + $0x8] sm:$0xff] %v525_v39  ;;  %v545_v44 = vpack.c.bf16 %v533_v40, %v532_v34  ;;  %570 = vst [vmem:[#allocation12 + $0x48] sm:$0xff] %v533_v40  ;;  %v1169_v45 = vpop.f32.mrb[4].mxu0  ;;  %v1177_v46 = vpop.f32.mrb[4].mxu1 }
 0x189   : > { %554 = vst [vmem:[#allocation2 + $0x8] sm:$0xff] %v542_v41  ;;  %558 = vst [vmem:[#allocation2 + $0x28] sm:$0xff] %v546_v42  ;;  %v486_v47 = vadd.f32 %v1169_v45, %v1052_v16  ;;  %v518_v48 = vadd.f32 %v1177_v46, %v1052_v16  ;;  %v477_v49 = vpop.f32.mrb[5].mxu0  ;;  %v509_v50 = vpop.f32.mrb[5].mxu1 }
 0x18a   : > { %553 = vst [vmem:[#allocation2] sm:$0xff] %v541_v43  ;;  %557 = vst [vmem:[#allocation2 + $0x20] sm:$0xff] %v545_v44  ;;  %v478_v51 = vadd.f32 %v1052_v16, %v477_v49  ;;  %v510_v52 = vadd.f32 %v1052_v16, %v509_v50  ;;  %v1170_v53 = vpop.f32.mrb[6].mxu0  ;;  %v1178_v54 = vpop.f32.mrb[6].mxu1 }
 0x18b   : > { %v530_v55 = vmax.f32 %v486_v47, 0.0  ;;  %v538_v56 = vmax.f32 %v518_v48, 0.0  ;;  %v489_v57 = vadd.f32 %v1170_v53, %v1052_v16  ;;  %v521_v58 = vadd.f32 %v1178_v54, %v1052_v16  ;;  %v480_v59 = vpop.f32.mrb[7].mxu0  ;;  %v512_v60 = vpop.f32.mrb[7].mxu1 }
 0x18c   : > { %v528_v61 = vmax.f32 %v478_v51, 0.0  ;;  %v536_v62 = vmax.f32 %v510_v52, 0.0  ;;  %v481_v63 = vadd.f32 %v1052_v16, %v480_v59  ;;  %v513_v0 = vadd.f32 %v1052_v16, %v512_v60 }
 0x18d   : > { %567 = vst [vmem:[#allocation12 + $0x30] sm:$0xff] %v530_v55  ;;  %575 = vst [vmem:[#allocation12 + $0x70] sm:$0xff] %v538_v56  ;;  %v531_v1 = vmax.f32 %v489_v57, 0.0  ;;  %v539_v2 = vmax.f32 %v521_v58, 0.0 }
 0x18e   : > { %565 = vst [vmem:[#allocation12 + $0x20] sm:$0xff] %v528_v61  ;;  %573 = vst [vmem:[#allocation12 + $0x60] sm:$0xff] %v536_v62  ;;  %v529_v3 = vmax.f32 %v481_v63, 0.0  ;;  %v537_v4 = vmax.f32 %v513_v0, 0.0 }
 0x18f   : > { %v544_v5 = vpack.c.bf16 %v531_v1, %v530_v55  ;;  %568 = vst [vmem:[#allocation12 + $0x38] sm:$0xff] %v531_v1  ;;  %v548_v6 = vpack.c.bf16 %v539_v2, %v538_v56  ;;  %576 = vst [vmem:[#allocation12 + $0x78] sm:$0xff] %v539_v2 }
 0x190   : > { %v543_v7 = vpack.c.bf16 %v529_v3, %v528_v61  ;;  %566 = vst [vmem:[#allocation12 + $0x28] sm:$0xff] %v529_v3  ;;  %v547_v8 = vpack.c.bf16 %v537_v4, %v536_v62  ;;  %574 = vst [vmem:[#allocation12 + $0x68] sm:$0xff] %v537_v4 }
 0x191   : > { %556 = vst [vmem:[#allocation2 + $0x18] sm:$0xff] %v544_v5  ;;  %560 = vst [vmem:[#allocation2 + $0x38] sm:$0xff] %v548_v6 }
 0x192   : > { %555 = vst [vmem:[#allocation2 + $0x10] sm:$0xff] %v543_v7  ;;  %559 = vst [vmem:[#allocation2 + $0x30] sm:$0xff] %v547_v8 }
 0x193 PF: > { %p1069_p7 = scmp.ne.s32.totalorder %s1623_s18, 1 }
 0x194   : > { %v597_v9 = vld [vmem:[#allocation2] sm:$0xff] (!%p1069_p7)  ;;  %v598_v10 = vld [vmem:[#allocation2 + $0x8] sm:$0xff] (!%p1069_p7)  ;;  %v752_v16 = vld [vmem:[#allocation9 + $0x10] sm:$0xff] (!%p1069_p7) }
 0x195   : > { %580 = sbr.rel (%p1069_p7) target bundleno = 896 (0x380), region = 68  ;;  %1179 = vmatprep.subr.bf16.mxu0 (!%p1069_p7), %v597_v9  ;;  %v1419_v11 = vld [vmem:[#allocation3] sm:$0xff] (!%p1069_p7)   ;;  %v751_v15 = vld [vmem:[#allocation9 + $0x8] sm:$0xff] (!%p1069_p7)  ;;  %v756_v25 = vld [vmem:[#allocation9 + $0x30] sm:$0xff] (!%p1069_p7) }
 0x196   : > { %1180 = vmatpush3.bf16.msra.mxu0 (!%p1069_p7), %v597_v9  ;;  %1195 = vmatprep.mubr.bf16.mxu0 (!%p1069_p7), %v1419_v11  ;;  %v750_v14 = vld [vmem:[#allocation9] sm:$0xff] (!%p1069_p7)  ;;  %v753_v17 = vld [vmem:[#allocation9 + $0x18] sm:$0xff] (!%p1069_p7)  ;;  %v755_v22 = vld [vmem:[#allocation9 + $0x28] sm:$0xff] (!%p1069_p7) }
 0x197   : > { %1181 = vmatprep.subr.bf16.mxu0 (!%p1069_p7), %v598_v10  ;;  %v601_v18 = vld [vmem:[#allocation2 + $0x20] sm:$0xff] (!%p1069_p7)  ;;  %v1267_v19 = vpack.c.bf16 (!%p1069_p7), %v751_v15, %v750_v14  ;;  %v1271_v20 = vpack.c.bf16 (!%p1069_p7), %v753_v17, %v752_v16  ;;  %v602_v23 = vld [vmem:[#allocation2 + $0x28] sm:$0xff] (!%p1069_p7)  ;;  %v760_v33 = vld [vmem:[#allocation9 + $0x50] sm:$0xff] (!%p1069_p7) }
 0x198   : > { %v600_v13 = vld [vmem:[#allocation2 + $0x18] sm:$0xff] (!%p1069_p7)  ;;  %v754_v21 = vld [vmem:[#allocation9 + $0x20] sm:$0xff] (!%p1069_p7)  ;;  %v759_v30 = vld [vmem:[#allocation9 + $0x48] sm:$0xff] (!%p1069_p7) }
 0x199   : > { %v599_v12 = vld [vmem:[#allocation2 + $0x10] sm:$0xff] (!%p1069_p7)  ;;  %1268 = vmatprep.subr.bf16.mxu1 (!%p1069_p7), %v1267_v19  ;;  %v1275_v24 = vpack.c.bf16 (!%p1069_p7), %v755_v22, %v754_v21  ;;  %v757_v26 = vld [vmem:[#allocation9 + $0x38] sm:$0xff] (!%p1069_p7)  ;;  %v758_v29 = vld [vmem:[#allocation9 + $0x40] sm:$0xff] (!%p1069_p7) }
 0x19a   : > { %1182 = vmatpush3.bf16.msra.mxu0 (!%p1069_p7), %v598_v10  ;;  %1270 = vmatpush3.bf16.msra.mxu1 (!%p1069_p7), %v1267_v19  ;;  %v603_v27 = vld [vmem:[#allocation2 + $0x30] sm:$0xff] (!%p1069_p7)  ;;  %v1279_v28 = vpack.c.bf16 (!%p1069_p7), %v757_v26, %v756_v25  ;;  %v604_v31 = vld [vmem:[#allocation2 + $0x38] sm:$0xff] (!%p1069_p7)  ;;  %v1283_v32 = vpack.c.bf16 (!%p1069_p7), %v759_v30, %v758_v29  ;;  %v1420_v36 = vld [vmem:[#allocation3 + $0x8] sm:$0xff] (!%p1069_p7)  }
 0x19b   : > { %1183 = vmatprep.subr.bf16.mxu0 (!%p1069_p7), %v599_v12  ;;  %1272 = vmatprep.subr.bf16.mxu1 (!%p1069_p7), %v1271_v20  ;;  %v761_v34 = vld [vmem:[#allocation9 + $0x58] sm:$0xff] (!%p1069_p7)  ;;  %v762_v37 = vld [vmem:[#allocation9 + $0x60] sm:$0xff] (!%p1069_p7)  ;;  %v763_v38 = vld [vmem:[#allocation9 + $0x68] sm:$0xff] (!%p1069_p7) }
 0x19c   : > { %v1287_v35 = vpack.c.bf16 %v761_v34, %v760_v33  ;;  %v1421_v39 = vld [vmem:[#allocation3 + $0x10] sm:$0xff]   ;;  %v1291_v40 = vpack.c.bf16 %v763_v38, %v762_v37  ;;  %v1422_v41 = vld [vmem:[#allocation3 + $0x18] sm:$0xff]   ;;  %v1423_v42 = vld [vmem:[#allocation3 + $0x20] sm:$0xff]  }
 0x19d   : > { %v1424_v43 = vld [vmem:[#allocation3 + $0x28] sm:$0xff]   ;;  %v1425_v44 = vld [vmem:[#allocation3 + $0x30] sm:$0xff]   ;;  %v1426_v45 = vld [vmem:[#allocation3 + $0x38] sm:$0xff]  }
 0x19e   : > { %1184 = vmatpush3.bf16.msra.mxu0 %v599_v12  ;;  %1274 = vmatpush3.bf16.msra.mxu1 %v1271_v20  ;;  %v764_v46 = vld [vmem:[#allocation9 + $0x70] sm:$0xff]  ;;  %v765_v47 = vld [vmem:[#allocation9 + $0x78] sm:$0xff]  ;;  %v1078_v1 = vld [vmem:[#allocation11] ss:$0 sm:$0xff] }
 0x19f   : > { %1185 = vmatprep.subr.bf16.mxu0 %v600_v13  ;;  %1276 = vmatprep.subr.bf16.mxu1 %v1275_v24  ;;  %v1295_v48 = vpack.c.bf16 %v765_v47, %v764_v46 }
 0x1a2   : > { %1186 = vmatpush3.bf16.msra.mxu0 %v600_v13  ;;  %1278 = vmatpush3.bf16.msra.mxu1 %v1275_v24 }
 0x1a3   : > { %1187 = vmatprep.subr.bf16.mxu0 %v601_v18  ;;  %1280 = vmatprep.subr.bf16.mxu1 %v1279_v28 }
 0x1a6   : > { %1188 = vmatpush3.bf16.msra.mxu0 %v601_v18  ;;  %1282 = vmatpush3.bf16.msra.mxu1 %v1279_v28 }
 0x1a7   : > { %1189 = vmatprep.subr.bf16.mxu0 %v602_v23  ;;  %1284 = vmatprep.subr.bf16.mxu1 %v1283_v32 }
 0x1aa   : > { %1190 = vmatpush3.bf16.msra.mxu0 %v602_v23  ;;  %1286 = vmatpush3.bf16.msra.mxu1 %v1283_v32 }
 0x1ab   : > { %1191 = vmatprep.subr.bf16.mxu0 %v603_v27  ;;  %1288 = vmatprep.subr.bf16.mxu1 %v1287_v35 }
 0x1ae   : > { %1192 = vmatpush3.bf16.msra.mxu0 %v603_v27  ;;  %1290 = vmatpush3.bf16.msra.mxu1 %v1287_v35 }
 0x1af   : > { %1193 = vmatprep.subr.bf16.mxu0 %v604_v31  ;;  %1292 = vmatprep.subr.bf16.mxu1 %v1291_v40 }
 0x1b2   : > { %1194 = vmatpush3.bf16.msra.mxu0 %v604_v31  ;;  %1294 = vmatpush3.bf16.msra.mxu1 %v1291_v40 }
 0x1b3   : > { %1296 = vmatprep.subr.bf16.mxu1 %v1295_v48 }
 0x1b5   : > { %1196 = vmatmul.mubr.bf16.vlgmr.msra.gmra.mrb[0].mxu0 %v1420_v36 }
 0x1b6   : > { %1199 = vmatprep.mubr.bf16.mxu0 %v1421_v39  ;;  %1298 = vmatpush3.bf16.msra.mxu1 %v1295_v48 }
 0x1bd   : > { %1200 = vmatmul.mubr.bf16.gmra.mrb[4].mxu0 %v1422_v41 }
 0x1be   : > { %1203 = vmatprep.mubr.bf16.mxu0 %v1423_v42 }
 0x1c5   : > { %1204 = vmatmul.mubr.bf16.gmra.mrb[8].mxu0 %v1424_v43 }
 0x1c6   : > { %1207 = vmatprep.mubr.bf16.mxu0 %v1425_v44 }
 0x1cd   : > { %1208 = vmatmul.mubr.bf16.gmra.mrb[12].mxu0 %v1426_v45 }
 0x288   : > { %v1197_v49 = vpop.f32.mrb[0].mxu0 }
 0x289   : > { %v687_v50 = vpop.f32.mrb[1].mxu0 }
 0x28a   : > { %v1198_v51 = vpop.f32.mrb[2].mxu0  ;;  %1243 = vmatprep.mubr.f32.mxu1 %v687_v50 }
 0x28b   : > { %v690_v52 = vpop.f32.mrb[3].mxu0 }
 0x28c   : > { %1244 = vmatmul.mubr.f32.vlgmr.msra.gmra.mrb[0].mxu1 %v690_v52 }
 0x28d   : > { %1246 = vmatprep.mubr.f32.mxu1 %v1197_v49 }
 0x290   : > { %v1201_v53 = vpop.f32.mrb[4].mxu0  ;;  %1247 = vmatmul.mubr.f32.gmra.mrb[2].mxu1 %v1198_v51 }
 0x291   : > { %v703_v54 = vpop.f32.mrb[5].mxu0 }
 0x292   : > { %v1202_v55 = vpop.f32.mrb[6].mxu0  ;;  %1249 = vmatprep.mubr.f32.mxu1 %v703_v54 }
 0x293   : > { %v706_v56 = vpop.f32.mrb[7].mxu0 }
 0x294   : > { %1250 = vmatmul.mubr.f32.gmra.mrb[4].mxu1 %v706_v56 }
 0x295   : > { %1252 = vmatprep.mubr.f32.mxu1 %v1201_v53 }
 0x298   : > { %v1205_v57 = vpop.f32.mrb[8].mxu0  ;;  %1253 = vmatmul.mubr.f32.gmra.mrb[6].mxu1 %v1202_v55 }
 0x299   : > { %v719_v58 = vpop.f32.mrb[9].mxu0 }
 0x29a   : > { %v1206_v59 = vpop.f32.mrb[10].mxu0  ;;  %1255 = vmatprep.mubr.f32.mxu1 %v719_v58 }
 0x29b   : > { %v722_v60 = vpop.f32.mrb[11].mxu0 }
 0x29c   : > { %1256 = vmatmul.mubr.f32.gmra.mrb[8].mxu1 %v722_v60 }
 0x29d   : > { %1258 = vmatprep.mubr.f32.mxu1 %v1205_v57 }
 0x2a0   : > { %v1209_v61 = vpop.f32.mrb[12].mxu0  ;;  %1259 = vmatmul.mubr.f32.gmra.mrb[10].mxu1 %v1206_v59 }
 0x2a1   : > { %v735_v62 = vpop.f32.mrb[13].mxu0 }
 0x2a2   : > { %v1210_v63 = vpop.f32.mrb[14].mxu0  ;;  %1261 = vmatprep.mubr.f32.mxu1 %v735_v62 }
 0x2a3   : > { %v738_v0 = vpop.f32.mrb[15].mxu0 }
 0x2a4   : > { %1262 = vmatmul.mubr.f32.gmra.mrb[12].mxu1 %v738_v0 }
 0x2a5   : > { %1264 = vmatprep.mubr.f32.mxu1 %v1209_v61 }
 0x2a8   : > { %1265 = vmatmul.mubr.f32.gmra.mrb[14].mxu1 %v1210_v63 }
 0x35f   : > { %v1245_v2 = vpop.f32.mrb[0].mxu1 }
 0x360   : > { %v845_v3 = vadd.f32 %v1245_v2, %v1078_v1  ;;  %v839_v4 = vpop.f32.mrb[1].mxu1 }
 0x361   : > { %v840_v5 = vadd.f32 %v1078_v1, %v839_v4 }
 0x362   : > { %919 = vst [vmem:[#allocation12 + $0x8] sm:$0xff] %v845_v3 }
 0x363   : > { %918 = vst [vmem:[#allocation12] sm:$0xff] %v840_v5  ;;  %v1248_v6 = vpop.f32.mrb[2].mxu1 }
 0x364   : > { %v855_v7 = vadd.f32 %v1248_v6, %v1078_v1  ;;  %v849_v8 = vpop.f32.mrb[3].mxu1 }
 0x365   : > { %v850_v9 = vadd.f32 %v1078_v1, %v849_v8 }
 0x366   : > { %921 = vst [vmem:[#allocation12 + $0x18] sm:$0xff] %v855_v7 }
 0x367   : > { %920 = vst [vmem:[#allocation12 + $0x10] sm:$0xff] %v850_v9  ;;  %v1251_v10 = vpop.f32.mrb[4].mxu1 }
 0x368   : > { %v865_v11 = vadd.f32 %v1251_v10, %v1078_v1  ;;  %v859_v12 = vpop.f32.mrb[5].mxu1 }
 0x369   : > { %v860_v13 = vadd.f32 %v1078_v1, %v859_v12 }
 0x36a   : > { %923 = vst [vmem:[#allocation12 + $0x28] sm:$0xff] %v865_v11 }
 0x36b   : > { %922 = vst [vmem:[#allocation12 + $0x20] sm:$0xff] %v860_v13  ;;  %v1254_v14 = vpop.f32.mrb[6].mxu1 }
 0x36c   : > { %v875_v15 = vadd.f32 %v1254_v14, %v1078_v1  ;;  %v869_v16 = vpop.f32.mrb[7].mxu1 }
 0x36d   : > { %v870_v17 = vadd.f32 %v1078_v1, %v869_v16 }
 0x36e   : > { %925 = vst [vmem:[#allocation12 + $0x38] sm:$0xff] %v875_v15 }
 0x36f   : > { %924 = vst [vmem:[#allocation12 + $0x30] sm:$0xff] %v870_v17  ;;  %v1257_v18 = vpop.f32.mrb[8].mxu1 }
 0x370   : > { %v885_v19 = vadd.f32 %v1257_v18, %v1078_v1  ;;  %v879_v20 = vpop.f32.mrb[9].mxu1 }
 0x371   : > { %v880_v21 = vadd.f32 %v1078_v1, %v879_v20 }
 0x372   : > { %927 = vst [vmem:[#allocation12 + $0x48] sm:$0xff] %v885_v19 }
 0x373   : > { %926 = vst [vmem:[#allocation12 + $0x40] sm:$0xff] %v880_v21  ;;  %v1260_v22 = vpop.f32.mrb[10].mxu1 }
 0x374   : > { %v895_v23 = vadd.f32 %v1260_v22, %v1078_v1  ;;  %v889_v24 = vpop.f32.mrb[11].mxu1 }
 0x375   : > { %v890_v25 = vadd.f32 %v1078_v1, %v889_v24 }
 0x376   : > { %929 = vst [vmem:[#allocation12 + $0x58] sm:$0xff] %v895_v23 }
 0x377   : > { %928 = vst [vmem:[#allocation12 + $0x50] sm:$0xff] %v890_v25  ;;  %v1263_v26 = vpop.f32.mrb[12].mxu1 }
 0x378   : > { %v905_v27 = vadd.f32 %v1263_v26, %v1078_v1  ;;  %v899_v28 = vpop.f32.mrb[13].mxu1 }
 0x379   : > { %v900_v29 = vadd.f32 %v1078_v1, %v899_v28 }
 0x37a   : > { %931 = vst [vmem:[#allocation12 + $0x68] sm:$0xff] %v905_v27 }
 0x37b   : > { %930 = vst [vmem:[#allocation12 + $0x60] sm:$0xff] %v900_v29  ;;  %v1266_v30 = vpop.f32.mrb[14].mxu1 }
 0x37c   : > { %v915_v31 = vadd.f32 %v1266_v30, %v1078_v1  ;;  %v909_v32 = vpop.f32.mrb[15].mxu1 }
 0x37d   : > { %v910_v33 = vadd.f32 %v1078_v1, %v909_v32 }
 0x37e   : > { %933 = vst [vmem:[#allocation12 + $0x78] sm:$0xff] %v915_v31 }
 0x37f   : > { %932 = vst [vmem:[#allocation12 + $0x70] sm:$0xff] %v910_v33 }
 0x380 PF: > { %p1841_p8 = scmp.eq.s32.totalorder %s1038_s21, 1  ;;  %s1642_s22 = smov [#allocation12]  }
 0x381   : > { %s943_s23 = sshll.u32 %s1642_s22, 4  ;;  %s944_s23 = int_to_ptr.vmem [resolvable:$true] %s943_s23 }
 0x382   : > { %s1567_s28 = scalar_lea.vmem %s944_s23, 2048  ;;  %p1574_p12 = scmp.lt.s32.totalorder %s944_s23, %s944_s23 }
 0x383   : > { %p1568_p9 = scmp.ne.s32.totalorder %s944_s23, %s1567_s28  ;;  %p1575_p13 = scmp.lt.s32.totalorder %s1567_s28, %s1567_s28 }
 0x385   : > { %p1569_p10 = pnand %p1568_p9, %p1841_p8  ;;  %p1576_p0 = por %p1575_p13, %p1574_p12 }
 0x387   : > { %p1570_p11 = pneg %p1569_p10 }
 0x389   : > { %p1577_p1 = pnand %p1576_p0, %p1570_p11 }
 0x38b   : > { %1580 = shalt.err (!%p1577_p1)
}
 0x38c   : > { %s1581_s21 = scalar_lea.hbm %s1881_s5, 2048 }
 0x38d   : > { %p1582_p4 = scmp.ne.s32.totalorder %s1881_s5, %s1581_s21  ;;  %p1587_p6 = scmp.lt.u32.totalorder %s1581_s21, %s1881_s5 }
 0x38f   : > { %p1583_p2 = pnand %p1582_p4, %p1841_p8 }
 0x391   : > { %p1584_p3 = pneg %p1583_p2 }
 0x393   : > { %p1589_p5 = pnand %p1587_p6, %p1584_p3 }
 0x395   : > { %1592 = shalt.err (!%p1589_p5)
}
 0x396   : > { %s1643_s11 = smov 128   ;;  %s1644_s12 = smov 8  }
 0x397   : > { %1336 = dma.vmem_to_hbm [thread:$0]  (%p1841_p8), %s944_s23, 2048, %s1881_s5, [#allocation5], %s1643_s11, %s1643_s11, %s1644_s12  }
 0x398   : > { %1618 = dma.done.wait (%p1841_p8), [#allocation5], 2048  }
 0x399   : > { %1620 = vsyncadd (%p1841_p8), [#allocation5], 4294965248 }
 0x39a PF: > { %s19_s20 = sadd.s32 1, %s1631_s20   ;;  %s1892_s18 = smov %s1627_s19 }
 0x39b   : > { %p16_p7 = scmp.ge.s32.totalorder %s19_s20, 4   ;;  %s1893_s19 = smov %s1895_s15 }
 0x39d   :  { %18 = sbr.rel (!%p16_p7) target bundleno = 5 (0x5), region = 96 }
 0x3a4   :  { %959 = vsyncpa [#allocation4], 1 }
 0x3a5   :  { %961 = vsyncpa [#allocation4 + $0x1], 1 }
 0x3a6   :  { %962 = vsyncpa [#allocation7], 1 }
 0x3a7   :  { %963 = vsyncpa [#allocation10], 1 }
 0x3a8   :  { %964 = vsyncpa [#allocation5], 1 }
 0x3a9   :  { %966 = vsyncpa [#allocation5 + $0x1], 1 }

</bundles_post_ra>
